<compile_context>
chip_gen: v6e
topology: v6e:2x2x1
jax: 0.10.0
libtpu: 0.0.40
codegen_flags: <defaults>
</compile_context>

<pallas_src>
import functools
import math

import jax
import jax.numpy as jnp
from jax.experimental import pallas as pl
from jax.experimental.pallas import tpu as pltpu


# ----------------------------------------------------------------------------
# helpers (shared by the Pallas kernels and the pure-JAX reference)
# ----------------------------------------------------------------------------
def _round_up(a, b):
    return ((a + b - 1) // b) * b


def _gelu(x):
    # TODO(synk): PyTorch F.gelu default is the exact erf GELU; the tanh
    # approximation is used in-kernel for a robust EUP-only lowering (~1e-3).
    c = 0.7978845608028654  # sqrt(2/pi)
    return 0.5 * x * (1.0 + jnp.tanh(c * (x + 0.044715 * x * x * x)))


def _layernorm(x, gamma, beta, eps=1e-5):
    mu = jnp.mean(x, axis=-1, keepdims=True)
    var = jnp.mean((x - mu) ** 2, axis=-1, keepdims=True)
    return (x - mu) * jax.lax.rsqrt(var + eps) * gamma + beta


# ----------------------------------------------------------------------------
# Pallas kernel 1: patch embedding (Conv2d with stride == kernel == matmul),
# row-tiled over B*N patch rows, bf16 operands, f32 accumulate.
# ----------------------------------------------------------------------------
def patch_embed_kernel(p_ref, w_ref, b_ref, o_ref):
    # p_ref: (rt, P) bf16   w_ref: (P, E) bf16   b_ref: (1, E) f32
    o_ref[...] = (
        jnp.dot(p_ref[...], w_ref[...], preferred_element_type=jnp.float32)
        + b_ref[...]
    ).astype(o_ref.dtype)


# ----------------------------------------------------------------------------
# Pallas kernel 2: transformer encoder stack + final LN + classifier head.
#   grid = (batch_tiles [parallel], depth [arbitrary, weight-streamed])
# ----------------------------------------------------------------------------
def vit_encoder_kernel(
    x_in_ref,
    wq_ref, wk_ref, wv_ref, bq_ref, bk_ref, bv_ref,
    wo_ref, bo_ref,
    w1_ref, b1_ref, w2_ref, b2_ref,
    g1_ref, be1_ref, g2_ref, be2_ref,
    gn_ref, bn_ref, wfc_ref, bfc_ref,
    out_ref,
    x_scr, ctx_scr,
    *, num_heads, seq_pad, seq_valid, images_per_tile,
):
    layer = pl.program_id(1)

    # first layer for this batch tile: load the token-folded activations.
    @pl.when(layer == 0)
    def _init():
        x_scr[...] = x_in_ref[...]

    H = num_heads
    T, E = x_scr.shape                    # T = images_per_tile * seq_pad
    dh = E // H
    scale = 1.0 / math.sqrt(dh)
    f32 = jnp.float32
    bf16 = jnp.bfloat16

    x = x_scr[...]                        # (T, E) f32 residual stream
    xh = jnp.broadcast_to(x.astype(bf16)[None], (H, T, E))

    # ---- head-batched QKV projections over ALL folded token rows ----
    q = jnp.einsum("hte,hed->htd", xh, wq_ref[0],
                   preferred_element_type=f32) + bq_ref[0]        # (H, T, dh)
    k = jnp.einsum("hte,hed->htd", xh, wk_ref[0],
                   preferred_element_type=f32) + bk_ref[0]
    v = jnp.einsum("hte,hed->htd", xh, wv_ref[0],
                   preferred_element_type=f32) + bv_ref[0]

    # ---- softmax(QK^T)V per image, batched over heads ----
    for img in range(images_per_tile):
        r0 = img * seq_pad
        qi = q[:, r0:r0 + seq_pad, :].astype(bf16)
        ki = k[:, r0:r0 + seq_pad, :].astype(bf16)
        vi = v[:, r0:r0 + seq_pad, :].astype(bf16)
        s = jnp.einsum("hqd,hkd->hqk", qi, ki,
                       preferred_element_type=f32) * scale        # (H, S, S)
        if seq_valid < seq_pad:           # mask padded key tokens
            kidx = jax.lax.broadcasted_iota(jnp.int32, s.shape, 2)
            s = jnp.where(kidx < seq_valid, s, -1e30)
        m = jnp.max(s, axis=-1, keepdims=True)
        p = jnp.exp(s - m)
        denom = jnp.sum(p, axis=-1, keepdims=True)
        p = p * pl.reciprocal(denom, approx=True)
        ctx = jnp.einsum("hqk,hkd->hqd", p.astype(bf16), vi,
                         preferred_element_type=f32)              # (H, S, dh)
        ctx_scr[:, r0:r0 + seq_pad, :] = ctx.astype(bf16)

    # ---- output projection: head-batched over all folded rows, then summed
    oh = jnp.einsum("htd,hde->hte", ctx_scr[...], wo_ref[0],
                    preferred_element_type=f32)                   # (H, T, E)
    attn = jnp.sum(oh, axis=0) + bo_ref[0]                        # (T, E)

    x = _layernorm(x + attn, g1_ref[0], be1_ref[0])               # post-LN

    # ---- feed-forward MLP on folded rows ----
    h1 = jnp.dot(x.astype(bf16), w1_ref[0],
                 preferred_element_type=f32) + b1_ref[0]          # (T, M)
    h1 = _gelu(h1)
    h2 = jnp.dot(h1.astype(bf16), w2_ref[0],
                 preferred_element_type=f32) + b2_ref[0]          # (T, E)
    x = _layernorm(x + h2, g2_ref[0], be2_ref[0])

    x_scr[...] = x

    # ---- final LayerNorm + classifier head (lane-dense padded logits) ----
    @pl.when(layer == pl.num_programs(1) - 1)
    def _final():
        xf = _layernorm(x_scr[...], gn_ref[...], bn_ref[...])
        logits = jnp.dot(xf.astype(bf16), wfc_ref[...],
                         preferred_element_type=f32) + bfc_ref[...]
        out_ref[...] = logits


# ----------------------------------------------------------------------------
# one-time parameter preparation (hoisted out of the per-call path)
# ----------------------------------------------------------------------------
def prepare_params(p, *, num_heads, num_classes):
    E = p["pos"].shape[-1]
    L = p["wqkv"].shape[0]
    H = num_heads
    dh = E // H
    C = num_classes
    C_pad = _round_up(C, 128)
    f32, bf16 = jnp.float32, jnp.bfloat16

    o = {}
    o["wp"] = p["patch_w"].reshape(E, -1).T.astype(bf16)          # (P, E)
    o["bp"] = p["patch_b"].reshape(1, E).astype(f32)
    o["pos"] = p["pos"].astype(f32)
    o["cls"] = p["cls"].astype(f32)

    wqkv_t = p["wqkv"].transpose(0, 2, 1)                         # (L, E, 3E)

    def head_major_w(w):                          # (L, E, E) -> (L, H, E, dh)
        return w.reshape(L, E, H, dh).transpose(0, 2, 1, 3)

    def head_major_b(b):                          # (L, E) -> (L, H, 1, dh)
        return b.reshape(L, H, 1, dh)

    o["wq"] = head_major_w(wqkv_t[:, :, 0 * E:1 * E]).astype(bf16)
    o["wk"] = head_major_w(wqkv_t[:, :, 1 * E:2 * E]).astype(bf16)
    o["wv"] = head_major_w(wqkv_t[:, :, 2 * E:3 * E]).astype(bf16)
    o["bq"] = head_major_b(p["bqkv"][:, 0 * E:1 * E]).astype(f32)
    o["bk"] = head_major_b(p["bqkv"][:, 1 * E:2 * E]).astype(f32)
    o["bv"] = head_major_b(p["bqkv"][:, 2 * E:3 * E]).astype(f32)

    o["wo"] = p["wo"].transpose(0, 2, 1).reshape(L, H, dh, E).astype(bf16)
    o["bo"] = p["bo"].reshape(L, 1, E).astype(f32)
    o["w1"] = p["w1"].transpose(0, 2, 1).astype(bf16)             # (L, E, M)
    o["b1"] = p["b1"].reshape(L, 1, -1).astype(f32)
    o["w2"] = p["w2"].transpose(0, 2, 1).astype(bf16)             # (L, M, E)
    o["b2"] = p["b2"].reshape(L, 1, E).astype(f32)
    o["g1"] = p["g1"].reshape(L, 1, E).astype(f32)
    o["be1"] = p["be1"].reshape(L, 1, E).astype(f32)
    o["g2"] = p["g2"].reshape(L, 1, E).astype(f32)
    o["be2"] = p["be2"].reshape(L, 1, E).astype(f32)
    o["gn"] = p["gn"].reshape(1, E).astype(f32)
    o["bn"] = p["bn"].reshape(1, E).astype(f32)
    o["wfc"] = jnp.zeros((E, C_pad), f32).at[:, :C].set(p["wfc"].T).astype(bf16)
    o["bfc"] = jnp.zeros((1, C_pad), f32).at[:, :C].set(p["bfc"][None, :])
    return o


# ----------------------------------------------------------------------------
# forward wrapper
# ----------------------------------------------------------------------------
def vit_forward(x, prep, *, px, py, num_heads, depth, num_classes):
    B, Cin, Himg, Wimg = x.shape
    ph, pw = Himg // px, Wimg // py
    N = ph * pw
    E = prep["pos"].shape[-1]
    S = N + 1
    S_pad = _round_up(S, 8)
    H = num_heads
    dh = E // H
    C_pad = prep["wfc"].shape[-1]

    # ---- glue: non-overlapping patch extraction (Conv2d stride==kernel) ----
    P = Cin * px * py
    patches = x.reshape(B, Cin, ph, px, pw, py).transpose(0, 2, 4, 1, 3, 5)
    patches = patches.reshape(B * N, P)
    R = B * N
    r_tile = min(256, _round_up(R, 8))
    R_pad = _round_up(R, r_tile)
    patches = jnp.pad(patches, ((0, R_pad - R), (0, 0))).astype(jnp.bfloat16)

    emb = pl.pallas_call(
        patch_embed_kernel,
        out_shape=jax.ShapeDtypeStruct((R_pad, E), jnp.float32),
        grid=(R_pad // r_tile,),
        in_specs=[
            pl.BlockSpec((r_tile, P), lambda i: (i, 0)),
            pl.BlockSpec((P, E), lambda i: (0, 0)),
            pl.BlockSpec((1, E), lambda i: (0, 0)),
        ],
        out_specs=pl.BlockSpec((r_tile, E), lambda i: (i, 0)),
        compiler_params=pltpu.CompilerParams(
            dimension_semantics=("parallel",)),
    )(patches, prep["wp"], prep["bp"])
    emb = emb[:R].reshape(B, N, E)

    # ---- glue: CLS token + positional embedding, pad tokens & batch ----
    cls_tok = jnp.broadcast_to(prep["cls"], (B, 1, E))
    seq = jnp.concatenate([cls_tok, emb], axis=1) + prep["pos"]   # (B, S, E)

    BT = max(1, min(B, 128 // S_pad))          # images folded per grid tile
    num_tiles = -(-B // BT)
    B_pad = num_tiles * BT
    seq = jnp.pad(seq, ((0, B_pad - B), (0, S_pad - S), (0, 0)))
    tokens = seq.reshape(B_pad * S_pad, E).astype(jnp.float32)
    T_tile = BT * S_pad

    def wspec(arr):                    # streamed per layer: block (1, ...)
        nd = arr.ndim
        return pl.BlockSpec((1,) + arr.shape[1:],
                            lambda t, l, nd=nd: (l,) + (0,) * (nd - 1))

    def cspec(arr):                    # layer-independent, fully resident
        nd = arr.ndim
        return pl.BlockSpec(arr.shape, lambda t, l, nd=nd: (0,) * nd)

    kernel = functools.partial(
        vit_encoder_kernel, num_heads=H, seq_pad=S_pad, seq_valid=S,
        images_per_tile=BT)

    logits_all = pl.pallas_call(
        kernel,
        out_shape=jax.ShapeDtypeStruct((B_pad * S_pad, C_pad), jnp.float32),
        grid=(num_tiles, depth),
        in_specs=[
            pl.BlockSpec((T_tile, E), lambda t, l: (t, 0)),
            wspec(prep["wq"]), wspec(prep["wk"]), wspec(prep["wv"]),
            wspec(prep["bq"]), wspec(prep["bk"]), wspec(prep["bv"]),
            wspec(prep["wo"]), wspec(prep["bo"]),
            wspec(prep["w1"]), wspec(prep["b1"]),
            wspec(prep["w2"]), wspec(prep["b2"]),
            wspec(prep["g1"]), wspec(prep["be1"]),
            wspec(prep["g2"]), wspec(prep["be2"]),
            cspec(prep["gn"]), cspec(prep["bn"]),
            cspec(prep["wfc"]), cspec(prep["bfc"]),
        ],
        out_specs=pl.BlockSpec((T_tile, C_pad), lambda t, l: (t, 0)),
        scratch_shapes=[
            pltpu.VMEM((T_tile, E), jnp.float32),       # residual stream
            pltpu.VMEM((H, T_tile, dh), jnp.bfloat16),  # attention context
        ],
        compiler_params=pltpu.CompilerParams(
            dimension_semantics=("parallel", "arbitrary"),
            vmem_limit_bytes=48 * 1024 * 1024,
        ),
    )(
        tokens,
        prep["wq"], prep["wk"], prep["wv"], prep["bq"], prep["bk"], prep["bv"],
        prep["wo"], prep["bo"], prep["w1"], prep["b1"], prep["w2"], prep["b2"],
        prep["g1"], prep["be1"], prep["g2"], prep["be2"],
        prep["gn"], prep["bn"], prep["wfc"], prep["bfc"],
    )

    cls_rows = jnp.arange(B) * S_pad           # CLS-token row of each image
    return logits_all[cls_rows, :num_classes]


# ----------------------------------------------------------------------------
# pure-JAX f32 reference (mirrors the PyTorch module's math)
# ----------------------------------------------------------------------------
def _ref_forward(x, p, *, px, py, num_heads, depth):
    B, Cin, Himg, Wimg = x.shape
    ph, pw = Himg // px, Wimg // py
    N = ph * pw
    E = p["pos"].shape[-1]
    dh = E // num_heads

    patches = x.reshape(B, Cin, ph, px, pw, py).transpose(0, 2, 4, 1, 3, 5)
    patches = patches.reshape(B, N, Cin * px * py)
    emb = patches @ p["patch_w"].reshape(E, -1).T + p["patch_b"]
    cls_tok = jnp.broadcast_to(p["cls"], (B, 1, E))
    xs = jnp.concatenate([cls_tok, emb], axis=1) + p["pos"]

    for l in range(depth):
        qkv = xs @ p["wqkv"][l].T + p["bqkv"][l]
        q, k, v = jnp.split(qkv, 3, axis=-1)

        def sh(t):
            return t.reshape(B, -1, num_heads, dh).transpose(0, 2, 1, 3)

        qh, kh, vh = sh(q), sh(k), sh(v)
        s = jnp.einsum("bhsd,bhtd->bhst", qh, kh) / math.sqrt(dh)
        pr = jax.nn.softmax(s, axis=-1)
        o = jnp.einsum("bhst,bhtd->bhsd", pr, vh).transpose(0, 2, 1, 3)
        o = o.reshape(B, -1, E) @ p["wo"][l].T + p["bo"][l]
        xs = _layernorm(xs + o, p["g1"][l], p["be1"][l])

        h = jax.nn.gelu(xs @ p["w1"][l].T + p["b1"][l], approximate=False)
        m = h @ p["w2"][l].T + p["b2"][l]
        xs = _layernorm(xs + m, p["g2"][l], p["be2"][l])

    c = _layernorm(xs[:, 0], p["gn"], p["bn"])
    return c @ p["wfc"].T + p["bfc"]


def init_params(key, *, in_ch, px, py, E, L, M, C, N):
    keys = jax.random.split(key, 16)

    def nrm(k, shape, std=0.02):
        return (std * jax.random.normal(k, shape)).astype(jnp.float32)

    p = {}
    p["patch_w"] = nrm(keys[0], (E, in_ch, px, py))          # Conv2d weight
    p["patch_b"] = nrm(keys[1], (E,))
    p["pos"] = nrm(keys[2], (1, N + 1, E))
    p["cls"] = nrm(keys[3], (1, 1, E))
    p["wqkv"] = nrm(keys[4], (L, 3 * E, E))                  # in_proj_weight
    p["bqkv"] = nrm(keys[5], (L, 3 * E))
    p["wo"] = nrm(keys[6], (L, E, E))                        # out_proj
    p["bo"] = nrm(keys[7], (L, E))
    p["w1"] = nrm(keys[8], (L, M, E))                        # linear1
    p["b1"] = nrm(keys[9], (L, M))
    p["w2"] = nrm(keys[10], (L, E, M))                       # linear2
    p["b2"] = nrm(keys[11], (L, E))
    p["g1"] = jnp.ones((L, E), jnp.float32)
    p["be1"] = jnp.zeros((L, E), jnp.float32)
    p["g2"] = jnp.ones((L, E), jnp.float32)
    p["be2"] = jnp.zeros((L, E), jnp.float32)
    p["gn"] = jnp.ones((E,), jnp.float32)                    # final LayerNorm
    p["bn"] = jnp.zeros((E,), jnp.float32)
    p["wfc"] = nrm(keys[12], (C, E))                         # classifier head
    p["bfc"] = jnp.zeros((C,), jnp.float32)
    return p


if __name__ == "__main__":
    # small shapes consistent with the module's forward:
    B, Cin, Himg, Wimg = 2, 4, 16, 16
    px = py = 8                       # -> 4 patches, sequence length 5
    E, num_heads, depth, mlp_dim, num_classes = 128, 4, 2, 256, 2

    key = jax.random.PRNGKey(0)
    kx, kp = jax.random.split(key)
    x = jax.random.normal(kx, (B, Cin, Himg, Wimg), jnp.float32)
    raw = init_params(
        kp, in_ch=Cin, px=px, py=py, E=E, L=depth, M=mlp_dim,
        C=num_classes, N=(Himg // px) * (Wimg // py),
    )
    prep = prepare_params(raw, num_heads=num_heads, num_classes=num_classes)

    out = vit_forward(x, prep, px=px, py=py, num_heads=num_heads,
                      depth=depth, num_classes=num_classes)
    out = jax.block_until_ready(out)

    ref = _ref_forward(x, raw, px=px, py=py, num_heads=num_heads, depth=depth)
    assert out.shape == (B, num_classes)
    if not jnp.allclose(out, ref, atol=5e-2, rtol=5e-2):
        err = jnp.max(jnp.abs(out - ref))
        raise AssertionError(f"kernel/ref mismatch (max|d|={err}):\n{out}\nvs\n{ref}")
    print("KERNEL_OK")
</pallas_src>

<mosaic_0001>
module attributes {stable_mosaic.version = 11 : i64} {
  func.func @patch_embed_kernel(%arg0: i32, %arg1: memref<8x256xbf16, #tpu.memory_space<vmem>>, %arg2: memref<256x128xbf16, #tpu.memory_space<vmem>>, %arg3: memref<1x128xf32, #tpu.memory_space<vmem>>, %arg4: memref<8x128xf32, #tpu.memory_space<vmem>>) attributes {dimension_semantics = [#tpu.dimension_semantics<parallel>], iteration_bounds = array<i64: 1>, scalar_prefetch = 0 : i64, scratch_operands = 0 : i64, tpu.core_type = #tpu.core_type<tc>, window_params = [{transform_indices = @transform_0, window_bounds = array<i64: 8, 256>}, {pipeline_mode = #tpu.pipeline_mode<synchronous>, transform_indices = @transform_1, window_bounds = array<i64: 256, 128>}, {pipeline_mode = #tpu.pipeline_mode<synchronous>, transform_indices = @transform_2, window_bounds = array<i64: 1, 128>}, {transform_indices = @transform_3, window_bounds = array<i64: 8, 128>}]} {
    %c0 = arith.constant 0 : index
    %c0_0 = arith.constant 0 : index
    %0 = vector.load %arg1[%c0, %c0_0] : memref<8x256xbf16, #tpu.memory_space<vmem>>, vector<8x256xbf16>
    %c0_1 = arith.constant 0 : index
    %c0_2 = arith.constant 0 : index
    %1 = vector.load %arg2[%c0_1, %c0_2] : memref<256x128xbf16, #tpu.memory_space<vmem>>, vector<256x128xbf16>
    %cst = arith.constant dense<0.000000e+00> : vector<8x128xf32>
    %2 = tpu.matmul %0, %1, %cst {dimension_numbers = #tpu.dot_dimension_numbers<[1], [0], [0], [1], [0, 0, 1, 1], [], []>} : vector<8x256xbf16>, vector<256x128xbf16>, vector<8x128xf32> -> vector<8x128xf32>
    %c0_3 = arith.constant 0 : index
    %c0_4 = arith.constant 0 : index
    %3 = vector.load %arg3[%c0_3, %c0_4] : memref<1x128xf32, #tpu.memory_space<vmem>>, vector<1x128xf32>
    %4 = vector.broadcast %3 : vector<1x128xf32> to vector<8x128xf32>
    %5 = arith.addf %2, %4 : vector<8x128xf32>
    %c0_5 = arith.constant 0 : index
    %c0_6 = arith.constant 0 : index
    %6 = vector.load %arg4[%c0_5, %c0_6] : memref<8x128xf32, #tpu.memory_space<vmem>>, vector<8x128xf32>
    tpu.vector_store %arg4[%c0_5, %c0_6], %5 {strides = array<i32>} : memref<8x128xf32, #tpu.memory_space<vmem>>, vector<8x128xf32>,
    return
  }
  func.func @transform_0(%arg0: i32) -> (i32, i32) {
    %c0_i32 = arith.constant 0 : i32
    %c0_i32_0 = arith.constant 0 : i32
    return %arg0, %c0_i32 : i32, i32
  }
  func.func @transform_1(%arg0: i32) -> (i32, i32) {
    %c0_i32 = arith.constant 0 : i32
    %c0_i32_0 = arith.constant 0 : i32
    %c0_i32_1 = arith.constant 0 : i32
    return %c0_i32, %c0_i32_0 : i32, i32
  }
  func.func @transform_2(%arg0: i32) -> (i32, i32) {
    %c0_i32 = arith.constant 0 : i32
    %c0_i32_0 = arith.constant 0 : i32
    %c0_i32_1 = arith.constant 0 : i32
    return %c0_i32, %c0_i32_0 : i32, i32
  }
  func.func @transform_3(%arg0: i32) -> (i32, i32) {
    %c0_i32 = arith.constant 0 : i32
    %c0_i32_0 = arith.constant 0 : i32
    return %arg0, %c0_i32 : i32, i32
  }
}

</mosaic_0001>

<bundles_post_ra>
// kernel: tpu_custom_call.1
= control target key start
LH: loop header
LB: loop body
LE: loop exit
PB: predicated region body
PF: predicated region fallthrough
CT: control target
= control target key end

     0   :  { %8 = vsyncpa [#allocation3], 0  ;;  %s409_s0 = inlined_call_operand.hbm [shape: bf16[8,256], index: 0, kind: input, shape index: {}]   ;;  %s410_s1 = inlined_call_operand.hbm [shape: bf16[256,128], index: 1, kind: input, shape index: {}]   ;;  %s411_s2 = inlined_call_operand.vmem [shape: f32[1,128], index: 2, kind: input, shape index: {}]   ;;  %s412_s3 = inlined_call_operand.hbm [shape: f32[8,128], index: 3, kind: output, shape index: {}]  }
   0x1   :  { %9 = vsyncpa [#allocation6], 0 }
   0x2   :  { %10 = vsyncpa [#allocation4], 0  ;;  %s372_s12 = smov [#allocation2]   ;;  %s373_s14 = smov [#allocation5]  }
   0x3   :  { %s17_s13 = sshll.u32 %s372_s12, 4  ;;  %s26_s15 = sshll.u32 %s373_s14, 4  ;;  %s18_s13 = int_to_ptr.vmem [resolvable:$true] %s17_s13  ;;  %s27_s15 = int_to_ptr.vmem [resolvable:$true] %s26_s15 }
   0x4   :  { %s314_s16 = scalar_lea.vmem %s18_s13, 128  ;;  %p319_p1 = scmp.lt.s32.totalorder %s18_s13, %s18_s13 }
   0x5   :  { %p315_p0 = scmp.ne.s32.totalorder %s18_s13, %s314_s16  ;;  %p320_p2 = scmp.lt.s32.totalorder %s314_s16, %s314_s16 }
   0x7   :  { %p321_p3 = por %p320_p2, %p319_p1 }
   0x9   :  { %p322_p4 = pnand %p321_p3, %p315_p0 }
   0xb   :  { %325 = shalt.err (!%p322_p4)
}
   0xc   :  { %20 = dma.hbm_to_vmem [thread:$0]  %s409_s0, 128, %s18_s13, [#allocation3]  }
   0xd   :  { %s334_s19 = scalar_lea.vmem %s27_s15, 2048  ;;  %p339_p6 = scmp.lt.s32.totalorder %s27_s15, %s27_s15 }
   0xe   :  { %p335_p5 = scmp.ne.s32.totalorder %s27_s15, %s334_s19  ;;  %p340_p7 = scmp.lt.s32.totalorder %s334_s19, %s334_s19 }
  0x10   :  { %p341_p8 = por %p340_p7, %p339_p6 }
  0x12   :  { %p342_p9 = pnand %p341_p8, %p335_p5 }
  0x14   :  { %345 = shalt.err (!%p342_p9)
}
  0x15   :  { %s374_s20 = smov 64   ;;  %s375_s21 = smov 4  }
  0x16   :  { %32 = dma.hbm_to_vmem [thread:$0]  %s410_s1, 2048, %s27_s15, [#allocation6], %s374_s20, %s374_s20, %s375_s21  }
  0x17   :  { %366 = dma.done.wait [#allocation3], 128  }
  0x18   :  { %367 = vsyncadd [#allocation3], 4294967168 }
  0x19   :  { %368 = dma.done.wait [#allocation6], 2048  }
  0x1a   :  { %369 = vsyncadd [#allocation6], 4294965248  ;;  %v288_v0 = vld [vmem:[#allocation5 + $0x78] sm:$0xff]   ;;  %v290_v2 = vld [vmem:[#allocation5 + $0x70] sm:$0xff]   ;;  %s376_s24 = smov [#allocation7]  }
  0x1b   :  { %v289_v1 = vld [vmem:[#allocation5 + $0x38] sm:$0xff]   ;;  %261 = vmatprep.subr.bf16.mxu0 %v288_v0  ;;  %v291_v3 = vld [vmem:[#allocation5 + $0x30] sm:$0xff]   ;;  %v292_v4 = vld [vmem:[#allocation5 + $0x68] sm:$0xff]   ;;  %s232_s25 = sshll.u32 %s376_s24, 4  ;;  %s233_s25 = int_to_ptr.vmem [resolvable:$true] %s232_s25 }
  0x1c   :  { %262 = vmatpush3.bf16.msra.mxu0 %v289_v1  ;;  %v293_v5 = vld [vmem:[#allocation5 + $0x28] sm:$0xff]   ;;  %v294_v6 = vld [vmem:[#allocation5 + $0x60] sm:$0xff]   ;;  %v296_v8 = vld [vmem:[#allocation5 + $0x58] sm:$0xff]   ;;  %s346_s26 = scalar_lea.vmem %s233_s25, 128  ;;  %p351_p11 = scmp.lt.s32.totalorder %s233_s25, %s233_s25 }
  0x1d   :  { %263 = vmatprep.subr.bf16.mxu0 %v290_v2  ;;  %v295_v7 = vld [vmem:[#allocation5 + $0x20] sm:$0xff]   ;;  %v297_v9 = vld [vmem:[#allocation5 + $0x18] sm:$0xff]   ;;  %v298_v10 = vld [vmem:[#allocation5 + $0x50] sm:$0xff]   ;;  %p347_p10 = scmp.ne.s32.totalorder %s233_s25, %s346_s26  ;;  %p352_p12 = scmp.lt.s32.totalorder %s346_s26, %s346_s26 }
  0x1e   :  { %v42_v11 = vld [vmem:[#allocation2] sm:$0xff]  ;;  %v299_v13 = vld [vmem:[#allocation5 + $0x10] sm:$0xff]   ;;  %v300_v14 = vld [vmem:[#allocation5 + $0x48] sm:$0xff]  }
  0x1f   :  { %v244_v12 = vcombine.high %v42_v11, %v42_v11  ;;  %v301_v15 = vld [vmem:[#allocation5 + $0x8] sm:$0xff]   ;;  %v302_v16 = vld [vmem:[#allocation5 + $0x40] sm:$0xff]   ;;  %v243_v18 = vcombine.low %v42_v11, %v42_v11  ;;  %v242_v20 = vld [vmem:[%s411_s2] ss:$0 sm:$0xff]  ;;  %p353_p13 = por %p352_p12, %p351_p11 }
  0x20   :  { %264 = vmatpush3.bf16.msra.mxu0 %v291_v3  ;;  %v303_v17 = vld [vmem:[#allocation5] sm:$0xff]  }
  0x21   :  { %265 = vmatprep.subr.bf16.mxu0 %v292_v4  ;;  %217 = vmatprep.mubr.bf16.mxu0 %v244_v12  ;;  %p354_p0 = pnand %p353_p13, %p347_p10 }
  0x24   :  { %266 = vmatpush3.bf16.msra.mxu0 %v293_v5 }
  0x25   :  { %267 = vmatprep.subr.bf16.mxu0 %v294_v6 }
  0x28   :  { %268 = vmatpush3.bf16.msra.mxu0 %v295_v7 }
  0x29   :  { %269 = vmatprep.subr.bf16.mxu0 %v296_v8 }
  0x2c   :  { %270 = vmatpush3.bf16.msra.mxu0 %v297_v9 }
  0x2d   :  { %271 = vmatprep.subr.bf16.mxu0 %v298_v10 }
  0x30   :  { %272 = vmatpush3.bf16.msra.mxu0 %v299_v13 }
  0x31   :  { %273 = vmatprep.subr.bf16.mxu0 %v300_v14 }
  0x34   :  { %274 = vmatpush3.bf16.msra.mxu0 %v301_v15 }
  0x35   :  { %275 = vmatprep.subr.bf16.mxu0 %v302_v16 }
  0x38   :  { %276 = vmatpush3.bf16.msra.mxu0 %v303_v17 }
  0x3b   :  { %218 = vmatmul.mubr.bf16.vlgmr.msra.gmra.mxu0 %v243_v18 }
  0xfb   :  { %v277_v19 = vpop.f32.mrf.mxu0 }
  0xfd   :  { %v278_v21 = vpop.f32.mrf.mxu0 }
  0xfe   :  { %v279_v22 = vadd.f32 %v278_v21, %v277_v19 }
  0xff   :  { %v280_v23 = vpop.f32.mrf.mxu0 }
 0x100   :  { %v220_v24 = vadd.f32 %v279_v22, %v242_v20 }
 0x101   :  { %v281_v25 = vpop.f32.mrf.mxu0 }
 0x102   :  { %225 = vst [vmem:[#allocation7] sm:$0xff] %v220_v24 }
 0x103   :  { %357 = shalt.err (!%p354_p0)
}
 0x104   :  { %235 = dma.vmem_to_hbm [thread:$0]  %s233_s25, 128, %s412_s3, [#allocation4]  }
 0x105   :  { %370 = dma.done.wait [#allocation4], 128  }
 0x106   :  { %371 = vsyncadd [#allocation4], 4294967168 }
 0x107   :  { %239 = vsyncpa [#allocation3], 1 }
 0x108   :  { %240 = vsyncpa [#allocation6], 1 }
 0x109   :  { %241 = vsyncpa [#allocation4], 1 }

</bundles_post_ra>
